<compile_context>
chip_gen: v5e
topology: v5e:2x2
jax: 0.10.0
libtpu: 0.0.40
codegen_flags: <defaults>
</compile_context>

<pallas_src>
import jax
import jax.numpy as jnp
from jax.experimental import pallas as pl
from jax.experimental.pallas import tpu as pltpu

_LANE = 128                       # lane width
_MAX_ROW_TILE = 256               # sublane-tile cap (multiple of 8)
_BLOCK_BYTES = 2 * 1024 * 1024    # ~2 MiB per block; in+out double-buffered -> ~8 MiB live
_VMEM_LIMIT_BYTES = 32 * 1024 * 1024  # explicit scoped-VMEM limit (safe on v5e/v6e/v7x)

# Dimension-semantics values; getattr keeps us safe on older jax builds.
_CORE_PARALLEL = getattr(pltpu, "CORE_PARALLEL", "parallel")
_PARALLEL = getattr(pltpu, "PARALLEL", "parallel")

# Cache of the row-axis semantics that is known to lower on this backend.
_row_sem_cache = []


def _copy_kernel(x_ref, o_ref):
    # Pure pass-through: input block == output block.
    o_ref[...] = x_ref[...]


def _round_up(v, m):
    return ((v + m - 1) // m) * m


def _build_call(r, l_out, dtype, tr, tl, row_sem):
    grid = (pl.cdiv(r, tr), pl.cdiv(l_out, tl))
    idx = lambda i, j: (i, j)
    return pl.pallas_call(
        _copy_kernel,
        out_shape=jax.ShapeDtypeStruct((r, l_out), dtype),
        grid=grid,
        in_specs=[pl.BlockSpec((tr, tl), idx)],
        out_specs=pl.BlockSpec((tr, tl), idx),
        compiler_params=pltpu.CompilerParams(
            dimension_semantics=(row_sem, _PARALLEL),
            vmem_limit_bytes=_VMEM_LIMIT_BYTES,
        ),
    )


def _chomp_rows(x2, l_out, tr, tl):
    """Run the tiled copy on the collapsed (rows, L) view."""
    r = x2.shape[0]
    candidates = list(_row_sem_cache) or [_CORE_PARALLEL, _PARALLEL]
    last_err = None
    for sem in candidates:
        try:
            out = _build_call(r, l_out, x2.dtype, tr, tl, sem)(x2)
            if not _row_sem_cache:
                _row_sem_cache.append(sem)
            return out
        except Exception as e:  # CORE_PARALLEL not supported -> plain parallel
            last_err = e
    raise last_err


def chomp1d(x: jax.Array, chomp_size: int) -> jax.Array:
    """Pallas equivalent of Chomp1d(chomp_size)(x) for x of shape (N, C, L)."""
    if chomp_size <= 0:
        raise ValueError("chomp_size must be positive")
    n, c, l = x.shape
    l_out = l - chomp_size
    if l_out <= 0:
        # TODO(synk): PyTorch would return an empty tensor here; Pallas cannot
        # emit zero-sized outputs, so we reject this degenerate case.
        raise ValueError("chomp_size must be smaller than the time dimension L")

    # Collapse (N, C) into one row axis: free row-major view; keeps per-block
    # DMAs large regardless of channel count.
    r = n * c
    x2 = x.reshape(r, l)
    itemsize = jnp.dtype(x.dtype).itemsize

    # Row (sublane) tile: full R if it fits, else 256 (multiple of 8).
    tr = r if r <= _MAX_ROW_TILE else _MAX_ROW_TILE

    # Lane tile: as long as possible (multiple of 128) within the per-block
    # byte budget -> dtype-scaled lanes, lane growth preferred over rows.
    tl_budget = max(_LANE, (_BLOCK_BYTES // (tr * itemsize)) // _LANE * _LANE)
    tl = min(tl_budget, _round_up(l_out, _LANE))

    out2 = _chomp_rows(x2, l_out, tr, tl)
    return out2.reshape(n, c, l_out)


if __name__ == "__main__":
    key = jax.random.PRNGKey(0)
    chomp_size = 3  # e.g. (kernel_size - 1) * dilation padding being chomped
    k1, k2, k3, k4 = jax.random.split(key, 4)

    # 1) Small shape with l_out < 128 (single partial lane tile, masked store).
    x_small = jax.random.normal(k1, (2, 4, 16), dtype=jnp.float32)
    y_small = jax.block_until_ready(chomp1d(x_small, chomp_size))
    assert y_small.shape == (2, 4, 13), y_small.shape
    assert jnp.array_equal(y_small, x_small[:, :, :-chomp_size])

    # 2) Lane-aligned kept window (pure unmasked pass-through tile).
    x_tiled = jax.random.normal(k2, (2, 8, 256 + chomp_size), dtype=jnp.float32)
    y_tiled = jax.block_until_ready(chomp1d(x_tiled, chomp_size))
    assert y_tiled.shape == (2, 8, 256), y_tiled.shape
    assert jnp.array_equal(y_tiled, x_tiled[:, :, :-chomp_size])

    # 3) Ragged lane edge (l_out not a multiple of 128).
    x_rag = jax.random.normal(k3, (1, 8, 300 + chomp_size), dtype=jnp.float32)
    y_rag = jax.block_until_ready(chomp1d(x_rag, chomp_size))
    assert y_rag.shape == (1, 8, 300), y_rag.shape
    assert jnp.array_equal(y_rag, x_rag[:, :, :-chomp_size])

    # 4) N*C > 256: multiple row tiles with a ragged final row tile.
    x_rows = jax.random.normal(k4, (3, 96, 40), dtype=jnp.float32)
    y_rows = jax.block_until_ready(chomp1d(x_rows, chomp_size))
    assert y_rows.shape == (3, 96, 37), y_rows.shape
    assert jnp.array_equal(y_rows, x_rows[:, :, :-chomp_size])

    print("KERNEL_OK")
</pallas_src>

<mosaic_0001>
module attributes {stable_mosaic.version = 11 : i64} {
  func.func @_copy_kernel(%arg0: i32, %arg1: i32, %arg2: memref<8x128xf32, #tpu.memory_space<vmem>>, %arg3: memref<8x128xf32, #tpu.memory_space<vmem>>) attributes {dimension_semantics = [#tpu.dimension_semantics<core_parallel>, #tpu.dimension_semantics<parallel>], iteration_bounds = array<i64: 1, 1>, scalar_prefetch = 0 : i64, scratch_operands = 0 : i64, tpu.core_type = #tpu.core_type<tc>, window_params = [{transform_indices = @transform_0, window_bounds = array<i64: 8, 128>}, {transform_indices = @transform_1, window_bounds = array<i64: 8, 128>}]} {
    %c0 = arith.constant 0 : index
    %c0_0 = arith.constant 0 : index
    %0 = vector.load %arg2[%c0, %c0_0] : memref<8x128xf32, #tpu.memory_space<vmem>>, vector<8x128xf32>
    %c0_1 = arith.constant 0 : index
    %c0_2 = arith.constant 0 : index
    %1 = vector.load %arg3[%c0_1, %c0_2] : memref<8x128xf32, #tpu.memory_space<vmem>>, vector<8x128xf32>
    tpu.vector_store %arg3[%c0_1, %c0_2], %0 {strides = array<i32>} : memref<8x128xf32, #tpu.memory_space<vmem>>, vector<8x128xf32>,
    return
  }
  func.func @transform_0(%arg0: i32, %arg1: i32) -> (i32, i32) {
    %c0_i32 = arith.constant 0 : i32
    return %arg0, %arg1 : i32, i32
  }
  func.func @transform_1(%arg0: i32, %arg1: i32) -> (i32, i32) {
    %c0_i32 = arith.constant 0 : i32
    return %arg0, %arg1 : i32, i32
  }
}

module attributes {stable_mosaic.version = 11 : i64} {
  func.func @_copy_kernel(%arg0: i32, %arg1: i32, %arg2: memref<8x128xf32, #tpu.memory_space<vmem>>, %arg3: memref<8x128xf32, #tpu.memory_space<vmem>>) attributes {dimension_semantics = [#tpu.dimension_semantics<parallel>, #tpu.dimension_semantics<parallel>], iteration_bounds = array<i64: 1, 1>, scalar_prefetch = 0 : i64, scratch_operands = 0 : i64, tpu.core_type = #tpu.core_type<tc>, window_params = [{transform_indices = @transform_0, window_bounds = array<i64: 8, 128>}, {transform_indices = @transform_1, window_bounds = array<i64: 8, 128>}]} {
    %c0 = arith.constant 0 : index
    %c0_0 = arith.constant 0 : index
    %0 = vector.load %arg2[%c0, %c0_0] : memref<8x128xf32, #tpu.memory_space<vmem>>, vector<8x128xf32>
    %c0_1 = arith.constant 0 : index
    %c0_2 = arith.constant 0 : index
    %1 = vector.load %arg3[%c0_1, %c0_2] : memref<8x128xf32, #tpu.memory_space<vmem>>, vector<8x128xf32>
    tpu.vector_store %arg3[%c0_1, %c0_2], %0 {strides = array<i32>} : memref<8x128xf32, #tpu.memory_space<vmem>>, vector<8x128xf32>,
    return
  }
  func.func @transform_0(%arg0: i32, %arg1: i32) -> (i32, i32) {
    %c0_i32 = arith.constant 0 : i32
    return %arg0, %arg1 : i32, i32
  }
  func.func @transform_1(%arg0: i32, %arg1: i32) -> (i32, i32) {
    %c0_i32 = arith.constant 0 : i32
    return %arg0, %arg1 : i32, i32
  }
}

</mosaic_0001>

<bundles_post_ra>
// kernel: tpu_custom_call.1
= control target key start
LH: loop header
LB: loop body
LE: loop exit
PB: predicated region body
PF: predicated region fallthrough
CT: control target
= control target key end

     0   :  { %s2_s6 = sld [smem:[#allocation0]]   ;;  %s130_s0 = inlined_call_operand.hbm [shape: f32[8,16], index: 0, kind: input, shape index: {}]   ;;  %s131_s1 = inlined_call_operand.hbm [shape: f32[8,13], index: 1, kind: output, shape index: {}]  }
   0x1   :  { %6 = vsyncpa [#allocation3], 0 }
   0x2   :  { %7 = vsyncpa [#allocation4], 0  ;;  %s106_s11 = smov [#allocation2]   ;;  %s58_s18 = scalar_lea.hbm %s130_s0, 8 }
   0x3   :  { %s17_s12 = sshll.u32 %s106_s11, 4  ;;  %s18_s12 = int_to_ptr.vmem [resolvable:$true] %s17_s12 }
   0x6   :  { %s50_s7 = sshll.u32 %s2_s6, 3 }
   0x7   :  { %s13_s10 = scalar_lea.hbm %s130_s0, %s50_s7 }
   0x8   :  { %s15_s13 = sshll.u32 %s13_s10, 4  ;;  %s16_s13 = int_to_ptr.hbm [resolvable:$true] %s15_s13 }
   0x9   :  { %s54_s14 = sshra.s32 %s16_s13, 4  ;;  %s55_s14 = int_to_ptr.hbm [resolvable:$true] %s54_s14 }
   0xa   :  { %s56_s15 = scalar_lea.hbm %s55_s14, 8 }
   0xb   :  { %p57_p0 = scmp.ne.s32.totalorder %s55_s14, %s56_s15  ;;  %p60_p1 = scmp.lt.s32.totalorder %s58_s18, %s56_s15 }
   0xd   :  { %p62_p2 = pnand %p60_p1, %p57_p0 }
   0xf   :  { %65 = shalt.err (!%p62_p2)
}
  0x10   :  { %20 = dma.hbm_to_vmem [thread:$0]  %s16_s13, 128, %s18_s12, [#allocation3]  }
  0x11   :  { %102 = dma.done.wait [#allocation3], 128  }
  0x12   :  { %103 = vsyncadd [#allocation3], 4294967168  ;;  %s32_s21 = scalar_lea.hbm %s131_s1, %s50_s7  ;;  %s107_s22 = smov [#allocation5]   ;;  %v25_v0 = vld [vmem:[#allocation2] sm:$0xff] }
  0x13   :  { %s34_s23 = sshll.u32 %s107_s22, 4  ;;  %s36_s24 = sshll.u32 %s32_s21, 4  ;;  %26 = vst [vmem:[#allocation5] sm:$0xff] %v25_v0  ;;  %s35_s23 = int_to_ptr.vmem [resolvable:$true] %s34_s23  ;;  %s37_s24 = int_to_ptr.hbm [resolvable:$true] %s36_s24 }
  0x14   :  { %s90_s25 = sshra.s32 %s37_s24, 4  ;;  %s94_s28 = scalar_lea.hbm %s131_s1, 8  ;;  %s91_s25 = int_to_ptr.hbm [resolvable:$true] %s90_s25 }
  0x15   :  { %s92_s0 = scalar_lea.hbm %s91_s25, 8 }
  0x16   :  { %p93_p3 = scmp.ne.s32.totalorder %s91_s25, %s92_s0  ;;  %p96_p4 = scmp.lt.s32.totalorder %s94_s28, %s92_s0 }
  0x18   :  { %p98_p5 = pnand %p96_p4, %p93_p3 }
  0x1a   :  { %101 = shalt.err (!%p98_p5)
}
  0x1b   :  { %39 = dma.vmem_to_hbm [thread:$0]  %s35_s23, 128, %s37_s24, [#allocation4]  }
  0x1c   :  { %104 = dma.done.wait [#allocation4], 128  }
  0x1d   :  { %105 = vsyncadd [#allocation4], 4294967168 }
  0x1e   :  { %44 = vsyncpa [#allocation3], 1 }
  0x1f   :  { %45 = vsyncpa [#allocation4], 1 }

// kernel: tpu_custom_call.1
= control target key start
LH: loop header
LB: loop body
LE: loop exit
PB: predicated region body
PF: predicated region fallthrough
CT: control target
= control target key end

     0   :  { %6 = vsyncpa [#allocation3], 0  ;;  %s114_s0 = inlined_call_operand.hbm [shape: f32[8,16], index: 0, kind: input, shape index: {}]   ;;  %s115_s1 = inlined_call_operand.hbm [shape: f32[8,13], index: 1, kind: output, shape index: {}]  }
   0x1   :  { %7 = vsyncpa [#allocation4], 0  ;;  %s13_s8 = sshll.u32 %s114_s0, 4  ;;  %s96_s9 = smov [#allocation2]   ;;  %s14_s8 = int_to_ptr.hbm [resolvable:$true] %s13_s8 }
   0x2   :  { %s15_s10 = sshll.u32 %s96_s9, 4  ;;  %s16_s10 = int_to_ptr.vmem [resolvable:$true] %s15_s10 }
   0x3   :  { %18 = dma.hbm_to_vmem [thread:$0]  %s14_s8, 128, %s16_s10, [#allocation3]  }
   0x4   :  { %92 = dma.done.wait [#allocation3], 128  }
   0x5   :  { %93 = vsyncadd [#allocation3], 4294967168  ;;  %s97_s11 = smov [#allocation5]   ;;  %s32_s15 = sshll.u32 %s115_s1, 4  ;;  %v23_v0 = vld [vmem:[#allocation2] sm:$0xff]  ;;  %s33_s15 = int_to_ptr.hbm [resolvable:$true] %s32_s15 }
   0x6   :  { %s30_s12 = sshll.u32 %s97_s11, 4  ;;  %24 = vst [vmem:[#allocation5] sm:$0xff] %v23_v0  ;;  %s31_s12 = int_to_ptr.vmem [resolvable:$true] %s30_s12 }
   0x7   :  { %35 = dma.vmem_to_hbm [thread:$0]  %s31_s12, 128, %s33_s15, [#allocation4]  }
   0x8   :  { %94 = dma.done.wait [#allocation4], 128  }
   0x9   :  { %95 = vsyncadd [#allocation4], 4294967168 }
   0xa   :  { %40 = vsyncpa [#allocation3], 1 }
   0xb   :  { %41 = vsyncpa [#allocation4], 1 }

</bundles_post_ra>
